<compile_context>
chip_gen: v6e
topology: v6e:2x2x1
jax: 0.10.0
libtpu: 0.0.40
codegen_flags: <defaults>
</compile_context>

<pallas_src>
import functools
import math

import jax
import jax.numpy as jnp
from jax import lax
from jax.experimental import pallas as pl
from jax.experimental.pallas import tpu as pltpu

MARGIN = 0.2
MAX_VIOLATION = True


def _contrastive_kernel(img_ref, cap_ref, drow_ref, dcol_ref, *out_refs,
                        tile_i, tile_j, rw, b_real, has_pad, margin,
                        max_violation):
    i = pl.program_id(0)
    j = pl.program_id(1)

    # MXU: (tile_i, D) x (tile_j, D) contracting on D -> (tile_i, tile_j),
    # f32 accumulation, no explicit transpose of the caption tile.
    scores = lax.dot_general(
        img_ref[...], cap_ref[...],
        dimension_numbers=(((1,), (1,)), ((), ())),
        preferred_element_type=jnp.float32)
    base = scores + jnp.float32(margin)

    # Masking (global diagonal = positive pairs, plus padded rows/cols) is
    # only needed on tiles that intersect the diagonal or the pad boundary.
    # Guard it with lax.cond so the (n^2 - n) clean tiles skip the
    # iota/compare/select VPU work entirely.
    overlap = jnp.logical_and(i * tile_i < (j + 1) * tile_j,
                              j * tile_j < (i + 1) * tile_i)
    needs_mask = overlap
    if has_pad:
        pad_rows = (i + 1) * tile_i > b_real
        pad_cols = (j + 1) * tile_j > b_real
        needs_mask = jnp.logical_or(needs_mask,
                                    jnp.logical_or(pad_rows, pad_cols))

    def _masked(b):
        rows = lax.broadcasted_iota(jnp.int32, b.shape, 0) + i * tile_i
        cols = lax.broadcasted_iota(jnp.int32, b.shape, 1) + j * tile_j
        m = rows == cols
        if has_pad:
            m = jnp.logical_or(m, jnp.logical_or(rows >= b_real,
                                                 cols >= b_real))
        # Push masked entries to a huge negative value; the hinge clamps
        # them to exactly 0 in both cost matrices.
        return jnp.where(m, jnp.float32(-1e30), b)

    base = lax.cond(needs_mask, _masked, lambda b: b, base)

    d1 = drow_ref[...].astype(jnp.float32)    # (tile_i, 1): diag of row tile
    d2 = dcol_ref[...].astype(jnp.float32)    # (1, tile_j): diag of col tile
    cost_s = jnp.maximum(base - d1, 0.0)      # hinge over captions
    cost_im = jnp.maximum(base - d2, 0.0)     # hinge over images

    if max_violation:
        rowacc_ref, colpart_ref = out_refs

        # (tile_i, rw) vreg-shaped running row max; the output block (indexed
        # only by i) doubles as the accumulator across the j axis.
        @pl.when(j == 0)
        def _():
            rowacc_ref[...] = jnp.zeros_like(rowacc_ref)

        acc = rowacc_ref[...]
        for g in range(tile_j // rw):             # lane-group max only (VPU)
            acc = jnp.maximum(acc, cost_s[:, g * rw:(g + 1) * rw])
        rowacc_ref[...] = acc

        # (8, tile_j) sublane-group column max for this (i, j) tile; complete
        # in a single grid step, stored lane-dense / unmasked.
        cmax = cost_im[0:8, :]
        for s in range(1, tile_i // 8):
            cmax = jnp.maximum(cmax, cost_im[s * 8:(s + 1) * 8, :])
        colpart_ref[0, :, :] = cmax
    else:
        (sumacc_ref,) = out_refs

        @pl.when(j == 0)
        def _():
            sumacc_ref[...] = jnp.zeros_like(sumacc_ref)

        tot = cost_s + cost_im
        acc = sumacc_ref[...]
        for g in range(tile_j // rw):             # lane-group partial sums
            acc = acc + tot[:, g * rw:(g + 1) * rw]
        sumacc_ref[...] = acc


def _vmem_estimate(tile_i, tile_j, d, itemsize, rw):
    buf = 2 * (tile_i + tile_j) * d * itemsize      # double-buffered emb tiles
    buf += 2 * (tile_i + tile_j) * 4                # diag side inputs
    buf += 2 * (tile_i * rw + 8 * tile_j) * 4       # output blocks
    buf += 5 * tile_i * tile_j * 4                  # f32 tile intermediates
    return buf


def _choose_tiling(b, d, itemsize):
    """Returns (b_pad, tile_i, tile_j)."""
    if b <= 512:
        # Small batch: a single tile per axis; captions fully VMEM-resident.
        b_pad = -(-b // 8) * 8
        return b_pad, b_pad, b_pad
    b_pad = -(-b // 128) * 128
    tile_j = 256 if b_pad % 256 == 0 else 128
    tile_i = 128
    budget = 40 << 20   # conservative: fits v7x's 64 MiB physical w/ headroom
    for cand in (1024, 512, 256, 128):
        if b_pad % cand:
            continue
        if _vmem_estimate(cand, tile_j, d, itemsize, 128) <= budget:
            tile_i = cand
            break
    return b_pad, tile_i, tile_j


def contrastive_loss(images_embedded, captions_embedded, margin=MARGIN,
                     max_violation=MAX_VIOLATION, tile_i=None, tile_j=None,
                     cast_inputs_to=None):
    # Optional bf16 cast of the matmul operands (f32 accumulation inside);
    # off by default to preserve exact module semantics.
    if cast_inputs_to is not None:
        images_embedded = images_embedded.astype(cast_inputs_to)
        captions_embedded = captions_embedded.astype(cast_inputs_to)

    B, D = images_embedded.shape
    assert captions_embedded.shape == (B, D)
    itemsize = jnp.dtype(images_embedded.dtype).itemsize

    _, auto_ti, auto_tj = _choose_tiling(B, D, itemsize)
    ti = auto_ti if tile_i is None else int(tile_i)
    tj = auto_tj if tile_j is None else int(tile_j)
    assert ti % 8 == 0 and tj % 8 == 0, (ti, tj)

    granule = (ti * tj) // math.gcd(ti, tj)
    b_pad = -(-B // granule) * granule
    n_i, n_j = b_pad // ti, b_pad // tj
    rw = 128 if tj % 128 == 0 else tj
    has_pad = b_pad != B

    imgs, caps = images_embedded, captions_embedded
    if has_pad:
        imgs = jnp.pad(imgs, ((0, b_pad - B), (0, 0)))
        caps = jnp.pad(caps, ((0, b_pad - B), (0, 0)))

    # Positive-pair similarities (matrix diagonal) as a cheap row-wise dot,
    # streamed as tiny (tile_i,1)/(1,tile_j) side inputs.
    diag = jnp.sum(imgs.astype(jnp.float32) * caps.astype(jnp.float32),
                   axis=1)
    diag_row = diag.reshape(b_pad, 1)
    diag_col = diag.reshape(1, b_pad)

    kernel = functools.partial(
        _contrastive_kernel, tile_i=ti, tile_j=tj, rw=rw, b_real=B,
        has_pad=has_pad, margin=float(margin),
        max_violation=bool(max_violation))

    if max_violation:
        out_shape = (jax.ShapeDtypeStruct((b_pad, rw), jnp.float32),
                     jax.ShapeDtypeStruct((n_i, 8, b_pad), jnp.float32))
        out_specs = (pl.BlockSpec((ti, rw), lambda i, j: (i, 0)),
                     pl.BlockSpec((1, 8, tj), lambda i, j: (i, 0, j)))
    else:
        out_shape = jax.ShapeDtypeStruct((b_pad, rw), jnp.float32)
        out_specs = pl.BlockSpec((ti, rw), lambda i, j: (i, 0))

    vmem_limit = int(min(max(1.5 * _vmem_estimate(ti, tj, D, itemsize, rw),
                             32 << 20), 60 << 20))

    out = pl.pallas_call(
        kernel,
        out_shape=out_shape,
        grid_spec=pltpu.PrefetchScalarGridSpec(
            num_scalar_prefetch=0,
            grid=(n_i, n_j),
            in_specs=[
                pl.BlockSpec((ti, D), lambda i, j: (i, 0)),   # image tile
                pl.BlockSpec((tj, D), lambda i, j: (j, 0)),   # caption tile
                pl.BlockSpec((ti, 1), lambda i, j: (i, 0)),   # diag (rows)
                pl.BlockSpec((1, tj), lambda i, j: (0, j)),   # diag (cols)
            ],
            out_specs=out_specs,
        ),
        # i carries no cross-tile state -> "parallel" (dual-TC on v7x);
        # j is the accumulation axis -> "arbitrary".
        compiler_params=pltpu.CompilerParams(
            dimension_semantics=("parallel", "arbitrary"),
            vmem_limit_bytes=vmem_limit),
    )(imgs, caps, diag_row, diag_col)

    if max_violation:
        rowacc, colpart = out
        row_max = jnp.max(rowacc, axis=1)           # (b_pad,)
        col_max = jnp.max(colpart, axis=(0, 1))     # (b_pad,)
        return (jnp.sum(row_max) + jnp.sum(col_max)) / B
    return jnp.sum(out) / B


def contrastive_loss_ref(images_embedded, captions_embedded, margin=MARGIN,
                         max_violation=MAX_VIOLATION):
    # Pure-JAX reference mirroring the PyTorch forward exactly.
    scores = jnp.dot(images_embedded.astype(jnp.float32),
                     captions_embedded.astype(jnp.float32).T,
                     precision=lax.Precision.HIGHEST)
    diag = jnp.diag(scores).reshape(-1, 1)
    cost_s = jnp.maximum(margin + scores - diag, 0.0)
    cost_im = jnp.maximum(margin + scores - diag.T, 0.0)
    eye = jnp.eye(scores.shape[0], dtype=bool)
    cost_s = jnp.where(eye, 0.0, cost_s)
    cost_im = jnp.where(eye, 0.0, cost_im)
    if max_violation:
        cost_s = jnp.max(cost_s, axis=1)
        cost_im = jnp.max(cost_im, axis=0)
    return (jnp.sum(cost_s) + jnp.sum(cost_im)) / images_embedded.shape[0]


if __name__ == "__main__":
    key = jax.random.PRNGKey(0)
    k1, k2, k3, k4 = jax.random.split(key, 4)

    # 1) Tiny batch, single-tile path (module-scale shapes).
    B, D = 8, 32
    img = jax.random.normal(k1, (B, D), dtype=jnp.float32)
    cap = jax.random.normal(k2, (B, D), dtype=jnp.float32)
    got = jax.block_until_ready(contrastive_loss(img, cap))
    want = jax.block_until_ready(contrastive_loss_ref(img, cap))
    assert jnp.allclose(got, want, rtol=5e-4, atol=5e-4), (got, want)

    # 2) Multi-tile grid, asymmetric tiles (tile_i > tile_j), ragged batch
    #    (B=300 padded to 512) -> exercises cond-guarded diag/pad masking,
    #    the j-accumulated row maxima and per-(i,j) column-max partials.
    B2, D2 = 300, 32
    img2 = jax.random.normal(k3, (B2, D2), dtype=jnp.float32)
    cap2 = jax.random.normal(k4, (B2, D2), dtype=jnp.float32)
    got2 = jax.block_until_ready(
        contrastive_loss(img2, cap2, tile_i=256, tile_j=128))
    want2 = jax.block_until_ready(contrastive_loss_ref(img2, cap2))
    assert jnp.allclose(got2, want2, rtol=5e-4, atol=5e-4), (got2, want2)

    # 3) Exact-multiple batch (no padding branch) on a 2x2 grid.
    img3, cap3 = img2[:256], cap2[:256]
    got3 = jax.block_until_ready(
        contrastive_loss(img3, cap3, tile_i=128, tile_j=128))
    want3 = jax.block_until_ready(contrastive_loss_ref(img3, cap3))
    assert jnp.allclose(got3, want3, rtol=5e-4, atol=5e-4), (got3, want3)

    # 4) max_violation=False (sum-of-violations) path.
    got4 = jax.block_until_ready(
        contrastive_loss(img2, cap2, max_violation=False,
                         tile_i=256, tile_j=128))
    want4 = jax.block_until_ready(
        contrastive_loss_ref(img2, cap2, max_violation=False))
    assert jnp.allclose(got4, want4, rtol=5e-4, atol=5e-4), (got4, want4)

    print("KERNEL_OK")
</pallas_src>

<mosaic_0001>
module attributes {stable_mosaic.version = 11 : i64} {
  func.func @_contrastive_kernel(%arg0: i32, %arg1: i32, %arg2: memref<8x32xf32, #tpu.memory_space<vmem>>, %arg3: memref<8x32xf32, #tpu.memory_space<vmem>>, %arg4: memref<8x1xf32, #tpu.memory_space<vmem>>, %arg5: memref<1x8xf32, #tpu.memory_space<vmem>>, %arg6: memref<8x8xf32, #tpu.memory_space<vmem>>, %arg7: memref<1x8x8xf32, #tpu.memory_space<vmem>>) attributes {dimension_semantics = [#tpu.dimension_semantics<parallel>, #tpu.dimension_semantics<arbitrary>], iteration_bounds = array<i64: 1, 1>, scalar_prefetch = 0 : i64, scratch_operands = 0 : i64, tpu.core_type = #tpu.core_type<tc>, window_params = [{transform_indices = @transform_0, window_bounds = array<i64: 8, 32>}, {transform_indices = @transform_1, window_bounds = array<i64: 8, 32>}, {transform_indices = @transform_2, window_bounds = array<i64: 8, 1>}, {transform_indices = @transform_3, window_bounds = array<i64: 1, 8>}, {transform_indices = @transform_4, window_bounds = array<i64: 8, 8>}, {transform_indices = @transform_5, window_bounds = array<i64: 1, 8, 8>}]} {
    %c0 = arith.constant 0 : index
    %c0_0 = arith.constant 0 : index
    %0 = vector.load %arg2[%c0, %c0_0] : memref<8x32xf32, #tpu.memory_space<vmem>>, vector<8x32xf32>
    %c0_1 = arith.constant 0 : index
    %c0_2 = arith.constant 0 : index
    %1 = vector.load %arg3[%c0_1, %c0_2] : memref<8x32xf32, #tpu.memory_space<vmem>>, vector<8x32xf32>
    %cst = arith.constant dense<0.000000e+00> : vector<8x8xf32>
    %2 = tpu.matmul %0, %1, %cst {dimension_numbers = #tpu.dot_dimension_numbers<[1], [1], [0], [0], [0, 0, 1, 0], [], []>} : vector<8x32xf32>, vector<8x32xf32>, vector<8x8xf32> -> vector<8x8xf32>
    %cst_3 = arith.constant 2.000000e-01 : f32
    %3 = vector.broadcast %cst_3 : f32 to vector<8x8xf32>
    %4 = arith.addf %2, %3 : vector<8x8xf32>
    %c8_i32 = arith.constant 8 : i32
    %5 = arith.muli %arg0, %c8_i32 : i32
    %c1_i32 = arith.constant 1 : i32
    %6 = arith.addi %arg1, %c1_i32 : i32
    %c8_i32_4 = arith.constant 8 : i32
    %7 = arith.muli %6, %c8_i32_4 : i32
    %8 = arith.cmpi slt, %5, %7 : i32
    %c8_i32_5 = arith.constant 8 : i32
    %9 = arith.muli %arg1, %c8_i32_5 : i32
    %c1_i32_6 = arith.constant 1 : i32
    %10 = arith.addi %arg0, %c1_i32_6 : i32
    %c8_i32_7 = arith.constant 8 : i32
    %11 = arith.muli %10, %c8_i32_7 : i32
    %12 = arith.cmpi slt, %9, %11 : i32
    %13 = arith.andi %8, %12 : i1
    %14 = arith.extui %13 : i1 to i32
    %c0_i32 = arith.constant 0 : i32
    %15 = arith.cmpi ne, %14, %c0_i32 : i32
    %16 = scf.if %15 -> (vector<8x8xf32>) {
      %36 = tpu.iota {dimensions = array<i32: 0>} : vector<8x8xi32>
      %c8_i32_23 = arith.constant 8 : i32
      %37 = arith.muli %arg0, %c8_i32_23 : i32
      %38 = vector.broadcast %37 : i32 to vector<8x8xi32>
      %39 = arith.addi %36, %38 : vector<8x8xi32>
      %40 = tpu.iota {dimensions = array<i32: 1>} : vector<8x8xi32>
      %c8_i32_24 = arith.constant 8 : i32
      %41 = arith.muli %arg1, %c8_i32_24 : i32
      %42 = vector.broadcast %41 : i32 to vector<8x8xi32>
      %43 = arith.addi %40, %42 : vector<8x8xi32>
      %44 = arith.cmpi eq, %39, %43 : vector<8x8xi32>
      %cst_25 = arith.constant -1.000000e+30 : f32
      %45 = vector.broadcast %cst_25 : f32 to vector<8x8xf32>
      %46 = arith.select %44, %45, %4 : vector<8x8xi1>, vector<8x8xf32>
      scf.yield %46 : vector<8x8xf32>
    } else {
      scf.yield %4 : vector<8x8xf32>
    }
    %c0_8 = arith.constant 0 : index
    %c0_9 = arith.constant 0 : index
    %17 = vector.load %arg4[%c0_8, %c0_9] : memref<8x1xf32, #tpu.memory_space<vmem>>, vector<8x1xf32>
    %c0_10 = arith.constant 0 : index
    %c0_11 = arith.constant 0 : index
    %18 = vector.load %arg5[%c0_10, %c0_11] : memref<1x8xf32, #tpu.memory_space<vmem>>, vector<1x8xf32>
    %19 = vector.broadcast %17 : vector<8x1xf32> to vector<8x8xf32>
    %20 = arith.subf %16, %19 : vector<8x8xf32>
    %cst_12 = arith.constant 0.000000e+00 : f32
    %21 = vector.broadcast %cst_12 : f32 to vector<8x8xf32>
    %22 = arith.maximumf %20, %21 : vector<8x8xf32>
    %23 = vector.broadcast %18 : vector<1x8xf32> to vector<8x8xf32>
    %24 = arith.subf %16, %23 : vector<8x8xf32>
    %cst_13 = arith.constant 0.000000e+00 : f32
    %25 = vector.broadcast %cst_13 : f32 to vector<8x8xf32>
    %26 = arith.maximumf %24, %25 : vector<8x8xf32>
    %c0_i32_14 = arith.constant 0 : i32
    %27 = arith.cmpi eq, %arg1, %c0_i32_14 : i32
    %28 = arith.extui %27 : i1 to i32
    %c0_i32_15 = arith.constant 0 : i32
    %29 = arith.cmpi ne, %28, %c0_i32_15 : i32
    scf.if %29 {
      %cst_23 = arith.constant 0.000000e+00 : f32
      %36 = vector.broadcast %cst_23 : f32 to vector<8x8xf32>
      %c0_24 = arith.constant 0 : index
      %c0_25 = arith.constant 0 : index
      %37 = vector.load %arg6[%c0_24, %c0_25] : memref<8x8xf32, #tpu.memory_space<vmem>>, vector<8x8xf32>
      tpu.vector_store %arg6[%c0_24, %c0_25], %36 {strides = array<i32>} : memref<8x8xf32, #tpu.memory_space<vmem>>, vector<8x8xf32>,
    } else {
    }
    %c0_16 = arith.constant 0 : index
    %c0_17 = arith.constant 0 : index
    %30 = vector.load %arg6[%c0_16, %c0_17] : memref<8x8xf32, #tpu.memory_space<vmem>>, vector<8x8xf32>
    %31 = arith.maximumf %30, %22 : vector<8x8xf32>
    %c0_18 = arith.constant 0 : index
    %c0_19 = arith.constant 0 : index
    %32 = vector.load %arg6[%c0_18, %c0_19] : memref<8x8xf32, #tpu.memory_space<vmem>>, vector<8x8xf32>
    tpu.vector_store %arg6[%c0_18, %c0_19], %31 {strides = array<i32>} : memref<8x8xf32, #tpu.memory_space<vmem>>, vector<8x8xf32>,
    %c0_20 = arith.constant 0 : index
    %c0_21 = arith.constant 0 : index
    %c0_22 = arith.constant 0 : index
    %33 = vector.load %arg7[%c0_20, %c0_21, %c0_22] : memref<1x8x8xf32, #tpu.memory_space<vmem>>, vector<1x8x8xf32>
    %34 = vector.shape_cast %33 : vector<1x8x8xf32> to vector<8x8xf32>
    %35 = vector.shape_cast %26 : vector<8x8xf32> to vector<1x8x8xf32>
    tpu.vector_store %arg7[%c0_20, %c0_21, %c0_22], %35 {strides = array<i32>} : memref<1x8x8xf32, #tpu.memory_space<vmem>>, vector<1x8x8xf32>,
    return
  }
  func.func @transform_0(%arg0: i32, %arg1: i32) -> (i32, i32) {
    %c0_i32 = arith.constant 0 : i32
    %c0_i32_0 = arith.constant 0 : i32
    return %arg0, %c0_i32 : i32, i32
  }
  func.func @transform_1(%arg0: i32, %arg1: i32) -> (i32, i32) {
    %c0_i32 = arith.constant 0 : i32
    %c0_i32_0 = arith.constant 0 : i32
    return %arg1, %c0_i32 : i32, i32
  }
  func.func @transform_2(%arg0: i32, %arg1: i32) -> (i32, i32) {
    %c0_i32 = arith.constant 0 : i32
    %c0_i32_0 = arith.constant 0 : i32
    return %arg0, %c0_i32 : i32, i32
  }
  func.func @transform_3(%arg0: i32, %arg1: i32) -> (i32, i32) {
    %c0_i32 = arith.constant 0 : i32
    %c0_i32_0 = arith.constant 0 : i32
    return %c0_i32, %arg1 : i32, i32
  }
  func.func @transform_4(%arg0: i32, %arg1: i32) -> (i32, i32) {
    %c0_i32 = arith.constant 0 : i32
    %c0_i32_0 = arith.constant 0 : i32
    return %arg0, %c0_i32 : i32, i32
  }
  func.func @transform_5(%arg0: i32, %arg1: i32) -> (i32, i32, i32) {
    %c0_i32 = arith.constant 0 : i32
    %c0_i32_0 = arith.constant 0 : i32
    return %arg0, %c0_i32, %arg1 : i32, i32, i32
  }
}

</mosaic_0001>

<bundles_post_ra>
// kernel: tpu_custom_call.1
= control target key start
LH: loop header
LB: loop body
LE: loop exit
PB: predicated region body
PF: predicated region fallthrough
CT: control target
= control target key end

     0   :  { %11 = vsyncpa [#allocation3], 0  ;;  %s336_s0 = inlined_call_operand.vmem [shape: f32[8,32], index: 0, kind: input, shape index: {}]   ;;  %s337_s1 = inlined_call_operand.hbm [shape: f32[8,32], index: 1, kind: input, shape index: {}]   ;;  %s338_s2 = inlined_call_operand.vmem [shape: f32[8,1], index: 2, kind: input, shape index: {}]   ;;  %s339_s3 = inlined_call_operand.vmem [shape: f32[1,8], index: 3, kind: input, shape index: {}]   ;;  %s340_s4 = inlined_call_operand.hbm [shape: f32[8,8], index: 4, kind: output, shape index: {0}]   ;;  %s341_s5 = inlined_call_operand.hbm [shape: f32[1,8,8], index: 5, kind: output, shape index: {1}]  }
   0x1   :  { %12 = vsyncpa [#allocation4], 0 }
   0x2   :  { %13 = vsyncpa [#allocation7], 0  ;;  %s279_s18 = smov [#allocation2]  }
   0x3   :  { %s22_s19 = sshll.u32 %s279_s18, 4  ;;  %s23_s19 = int_to_ptr.vmem [resolvable:$true] %s22_s19 }
   0x4   :  { %s221_s20 = scalar_lea.vmem %s23_s19, 128  ;;  %p226_p1 = scmp.lt.s32.totalorder %s23_s19, %s23_s19 }
   0x5   :  { %p222_p0 = scmp.ne.s32.totalorder %s23_s19, %s221_s20  ;;  %p227_p2 = scmp.lt.s32.totalorder %s221_s20, %s221_s20 }
   0x7   :  { %p228_p3 = por %p227_p2, %p226_p1 }
   0x9   :  { %p229_p4 = pnand %p228_p3, %p222_p0 }
   0xb   :  { %232 = shalt.err (!%p229_p4)
}
   0xc   :  { %25 = dma.hbm_to_vmem [thread:$0]  %s337_s1, 128, %s23_s19, [#allocation3]  }
   0xd   :  { %273 = dma.done.wait [#allocation3], 128  }
   0xe   :  { %274 = vsyncadd [#allocation3], 4294967168  ;;  %vm160_vm0 = vcmask 64512   ;;  %v280_v0 = vmov 0.0   ;;  %vm281_vm1 = vmmov 0   ;;  %v282_v1 = vmov 0  }
   0xf   :  { %201 = vmatprep.subr.mxu0 %v280_v0  ;;  %161 = vst.msk [vmem:[#allocation5] sm:$0xff] %vm160_vm0, %v280_v0  ;;  %203 = vmatprep.mubr.msk.f32.mxu0 %vm281_vm1, %v280_v0  ;;  %vm35_vm2 = vcmask 261120   ;;  %v34_v2 = vld [vmem:[#allocation2] sm:$0xff]  ;;  %v124_v5 = vlaneseq }
  0x10   :  { %212 = vset.pattern.permute.xlu0 %v282_v1  ;;  %v139_v3 = vld [vmem:[%s338_s2] sm:$0xff]  ;;  %202 = vmatpush3.xpose.msk.msra.mxu0 %vm35_vm2, %v34_v2  ;;  %s283_s2 = smov [#allocation6]  }
  0x11   :  { %v33_v4 = vld [vmem:[%s336_s0] sm:$0xff]  ;;  %143 = vperm.xlu0 %212, %v139_v3   ;;  %v125_v6 = vshrl.u32 %v124_v5, 7  ;;  %v129_v7 = vand.u32 127, %v124_v5  ;;  %s183_s28 = sshll.u32 %s283_s2, 4  ;;  %s284_s0 = smov [#allocation5]   ;;  %s184_s28 = int_to_ptr.vmem [resolvable:$true] %s183_s28 }
  0x12   :  { %v198_v10 = vld [vmem:[%s339_s3] ss:$0 sm:$0xff]  ;;  %s173_s29 = sshll.u32 %s284_s0, 4  ;;  %s233_s30 = scalar_lea.vmem %s184_s28, 128  ;;  %s174_s29 = int_to_ptr.vmem [resolvable:$true] %s173_s29 }
  0x13   :  { %204 = vmatmul.mubr.msk.f32.vlgmr.msra.gmra.mxu0 %vm35_vm2, %v33_v4  ;;  %vm132_vm3 = vcmp.eq.s32.totalorder %v125_v6, %v129_v7  ;;  %p234_p5 = scmp.ne.s32.totalorder %s184_s28, %s233_s30  ;;  %p238_p6 = scmp.lt.s32.totalorder %s184_s28, %s184_s28 }
  0x14   :  { %p239_p7 = scmp.lt.s32.totalorder %s233_s30, %s233_s30 }
  0x16   :  { %v162_v16 = vld [vmem:[#allocation5] sm:$0xff]  ;;  %p240_p8 = por %p239_p7, %p238_p6 }
  0x18   :  { %p241_p9 = pnand %p240_p8, %p234_p5 }
  0x8c   :  { %v144_v11 = vpop.permute.xlu0 %143 }
  0xd3   :  { %v108_v8 = vpop.f32.mrf.mxu0 }
  0xd4   :  { %v109_v9 = vadd.f32 0.2, %v108_v8 }
  0xd5   :  { %v205_v12 = vpop.f32.mrf.mxu0 }
  0xd6   :  { %v133_v13 = vsel %vm132_vm3, -1e+30, %v109_v9 }
  0xd7   :  { %v146_v14 = vsub.f32 %v133_v13, %v144_v11  ;;  %v154_v15 = vsub.f32 %v133_v13, %v198_v10 }
  0xd9   :  { %v147_v17 = vmax.f32 %v146_v14, 0.0  ;;  %v155_v18 = vmax.f32 %v154_v15, 0.0 }
  0xdb   :  { %v163_v19 = vmax.f32 %v162_v16, %v147_v17  ;;  %166 = vst.msk [vmem:[#allocation6] sm:$0xff] %vm160_vm0, %v155_v18 }
  0xdc   :  { %244 = shalt.err (!%p241_p9)
}
  0xdd   :  { %186 = dma.vmem_to_hbm [thread:$0]  %s184_s28, 128, %s341_s5, [#allocation7]   ;;  %165 = vst.msk [vmem:[#allocation5] sm:$0xff] %vm160_vm0, %v163_v19 }
  0xde   :  { %s253_s7 = scalar_lea.vmem %s174_s29, 128  ;;  %p258_p11 = scmp.lt.s32.totalorder %s174_s29, %s174_s29 }
  0xdf   :  { %p254_p10 = scmp.ne.s32.totalorder %s174_s29, %s253_s7  ;;  %p259_p12 = scmp.lt.s32.totalorder %s253_s7, %s253_s7 }
  0xe1   :  { %p260_p13 = por %p259_p12, %p258_p11 }
  0xe3   :  { %p261_p0 = pnand %p260_p13, %p254_p10 }
  0xe5   :  { %264 = shalt.err (!%p261_p0)
}
  0xe6   :  { %176 = dma.vmem_to_hbm [thread:$0]  %s174_s29, 128, %s340_s4, [#allocation4]  }
  0xe7   :  { %275 = dma.done.wait [#allocation4], 128  }
  0xe8   :  { %276 = vsyncadd [#allocation4], 4294967168 }
  0xe9   :  { %277 = dma.done.wait [#allocation7], 128  }
  0xea   :  { %278 = vsyncadd [#allocation7], 4294967168 }
  0xeb   :  { %193 = vsyncpa [#allocation3], 1 }
  0xec   :  { %194 = vsyncpa [#allocation4], 1 }
  0xed   :  { %195 = vsyncpa [#allocation7], 1 }

</bundles_post_ra>
